<compile_context>
chip_gen: v5e
topology: v5e:2x2
jax: 0.10.0
libtpu: 0.0.40
codegen_flags: <defaults>
</compile_context>

<pallas_src>
import functools

import jax
import jax.numpy as jnp
from jax import lax
from jax.experimental import pallas as pl
from jax.experimental.pallas import tpu as pltpu


def _input_conv_kernel(a_ref, x_ref, o_ref, *, offsets, ln):
    """Single grid step covering the whole (batch-folded) problem.

    a_ref : (9, D_out, Kd)  bf16  banded weights, one (D_out, Kd) slab per tap
    x_ref : (Kd, LN)        bf16  padded volume; lanes = batch x flat spatial
    o_ref : (D_out, LN)     f32   relu(conv) on padded spatial positions
    """
    x = x_ref[...]                                    # (Kd, LN) bf16
    acc = jnp.zeros(o_ref.shape, jnp.float32)
    for t, off in enumerate(offsets):                 # 9 static taps, unrolled
        p = jnp.dot(a_ref[t], x, preferred_element_type=jnp.float32)
        if off != 0:
            # acc[:, q] needs p[:, q + off]  ->  roll by -off (lane rotation, XLU)
            p = pltpu.roll(p, shift=(-off) % ln, axis=1)
        acc = acc + p
    o_ref[...] = jnp.maximum(acc, 0.0)                # ReLU, f32


def input_conv(x, weight, *, window_len=32, sliding_len=4):
    """x: (N, 1, D, H, W) f32, weight: (1, 1, window_len, 3, 3) f32.

    Returns (N, D_out, H, W) = relu(conv3d(x, weight)).squeeze(1).
    """
    N, C, D, H, W = x.shape
    assert C == 1
    pad_d = window_len // 2 - 2
    D_pad = D + 2 * pad_d
    D_out = (D_pad - window_len) // sliding_len + 1
    Hp, Wp = H + 2, W + 2
    S = Hp * Wp                                        # flat padded plane
    S_pad = ((S + 127) // 128) * 128                   # lane-dense per-batch segment
    Kd = ((D_pad + 7) // 8) * 8                        # contraction dim (sublane: %8)
    LN = N * S_pad

    # ---- wrapper: pad + flatten only (no im2col, no 9x inflation) ----
    xp = jnp.pad(x[:, 0].astype(jnp.float32),
                 ((0, 0), (pad_d, pad_d), (1, 1), (1, 1)))        # (N, D_pad, Hp, Wp)
    xf = xp.reshape(N, D_pad, S)
    xf = jnp.pad(xf, ((0, 0), (0, Kd - D_pad), (0, S_pad - S)))   # (N, Kd, S_pad)
    xf = xf.transpose(1, 0, 2).reshape(Kd, LN).astype(jnp.bfloat16)

    # ---- banded weights: one (D_out, Kd) slab per spatial tap t = kh*3+kw ----
    w2 = weight.reshape(window_len, 9).astype(jnp.float32)
    band = jnp.zeros((D_out, Kd, 9), jnp.float32)
    for do in range(D_out):
        d0 = do * sliding_len
        band = band.at[do, d0:d0 + window_len, :].set(w2)
    a = band.transpose(2, 0, 1).astype(jnp.bfloat16)              # (9, D_out, Kd)

    # flat spatial offset of each tap on the padded plane (row-major, width Wp)
    offsets = tuple((kh - 1) * Wp + (kw - 1) for kh in range(3) for kw in range(3))

    kernel = functools.partial(_input_conv_kernel, offsets=offsets, ln=LN)
    out_flat = pl.pallas_call(
        kernel,
        out_shape=jax.ShapeDtypeStruct((D_out, LN), jnp.float32),
        grid_spec=pltpu.PrefetchScalarGridSpec(
            num_scalar_prefetch=0,
            grid=(1,),
            in_specs=[
                pl.BlockSpec((9, D_out, Kd), lambda i: (0, 0, 0)),
                pl.BlockSpec((Kd, LN), lambda i: (0, 0)),
            ],
            out_specs=pl.BlockSpec((D_out, LN), lambda i: (0, 0)),
        ),
        compiler_params=pltpu.CompilerParams(
            dimension_semantics=("arbitrary",)),
    )(a, xf)

    # extract interior (valid) spatial positions of each batch segment
    out = out_flat.reshape(D_out, N, S_pad)[:, :, :S].reshape(D_out, N, Hp, Wp)
    out = out[:, :, 1:1 + H, 1:1 + W].transpose(1, 0, 2, 3)       # (N, D_out, H, W)
    return out


def _reference(x, weight, *, window_len=32, sliding_len=4):
    pad_d = window_len // 2 - 2
    dn = lax.conv_dimension_numbers(x.shape, weight.shape,
                                    ("NCDHW", "OIDHW", "NCDHW"))
    y = lax.conv_general_dilated(
        x, weight,
        window_strides=(sliding_len, 1, 1),
        padding=((pad_d, pad_d), (1, 1), (1, 1)),
        dimension_numbers=dn,
        precision=lax.Precision.HIGHEST)
    return jnp.maximum(y, 0.0)[:, 0]          # squeeze channel dim


if __name__ == "__main__":
    window_len, sliding_len = 32, 4
    N, D, H, W = 2, 16, 16, 16

    key = jax.random.PRNGKey(0)
    kx, kw = jax.random.split(key)
    x = jax.random.normal(kx, (N, 1, D, H, W), dtype=jnp.float32)
    # deterministic synthetic weight (Conv3d(1,1,(32,3,3)) -> (1,1,32,3,3))
    weight = jax.random.normal(kw, (1, 1, window_len, 3, 3),
                               dtype=jnp.float32) / (window_len * 9) ** 0.5

    out = input_conv(x, weight, window_len=window_len, sliding_len=sliding_len)
    out = jax.block_until_ready(out)

    ref = _reference(x, weight, window_len=window_len, sliding_len=sliding_len)
    assert out.shape == ref.shape, (out.shape, ref.shape)
    # bf16 operands on the MXU (f32 accumulate): ~0.4% per-term rounding over a
    # 288-term reduction -> up to ~1e-2 abs error vs the f32 reference.
    assert jnp.allclose(out, ref, atol=2e-2, rtol=2e-2), float(
        jnp.max(jnp.abs(out - ref)))

    print("KERNEL_OK")
</pallas_src>

<mosaic_0001>
module attributes {stable_mosaic.version = 11 : i64} {
  func.func @_input_conv_kernel(%arg0: i32, %arg1: memref<9x4x48xbf16, #tpu.memory_space<vmem>>, %arg2: memref<48x768xbf16, #tpu.memory_space<vmem>>, %arg3: memref<4x768xf32, #tpu.memory_space<vmem>>) attributes {dimension_semantics = [#tpu.dimension_semantics<arbitrary>], iteration_bounds = array<i64: 1>, scalar_prefetch = 0 : i64, scratch_operands = 0 : i64, tpu.core_type = #tpu.core_type<tc>, window_params = [{pipeline_mode = #tpu.pipeline_mode<synchronous>, transform_indices = @transform_0, window_bounds = array<i64: 9, 4, 48>}, {pipeline_mode = #tpu.pipeline_mode<synchronous>, transform_indices = @transform_1, window_bounds = array<i64: 48, 768>}, {pipeline_mode = #tpu.pipeline_mode<synchronous>, transform_indices = @transform_2, window_bounds = array<i64: 4, 768>}]} {
    %c0 = arith.constant 0 : index
    %c0_0 = arith.constant 0 : index
    %0 = vector.load %arg2[%c0, %c0_0] : memref<48x768xbf16, #tpu.memory_space<vmem>>, vector<48x768xbf16>
    %cst = arith.constant 0.000000e+00 : f32
    %1 = vector.broadcast %cst : f32 to vector<4x768xf32>
    %c0_1 = arith.constant 0 : index
    %c0_2 = arith.constant 0 : index
    %c0_3 = arith.constant 0 : index
    %2 = vector.load %arg1[%c0_1, %c0_2, %c0_3] : memref<9x4x48xbf16, #tpu.memory_space<vmem>>, vector<1x4x48xbf16>
    %3 = vector.shape_cast %2 : vector<1x4x48xbf16> to vector<4x48xbf16>
    %cst_4 = arith.constant dense<0.000000e+00> : vector<4x768xf32>
    %4 = tpu.matmul %3, %0, %cst_4 {dimension_numbers = #tpu.dot_dimension_numbers<[1], [0], [0], [1], [0, 0, 1, 1], [], []>} : vector<4x48xbf16>, vector<48x768xbf16>, vector<4x768xf32> -> vector<4x768xf32>
    %c19_i32 = arith.constant 19 : i32
    %5 = tpu.dynamic_rotate %4 by %c19_i32 dim 1 : vector<4x768xf32>, i32 -> vector<4x768xf32>
    %6 = arith.addf %1, %5 : vector<4x768xf32>
    %c1 = arith.constant 1 : index
    %c0_5 = arith.constant 0 : index
    %c0_6 = arith.constant 0 : index
    %7 = vector.load %arg1[%c1, %c0_5, %c0_6] : memref<9x4x48xbf16, #tpu.memory_space<vmem>>, vector<1x4x48xbf16>
    %8 = vector.shape_cast %7 : vector<1x4x48xbf16> to vector<4x48xbf16>
    %cst_7 = arith.constant dense<0.000000e+00> : vector<4x768xf32>
    %9 = tpu.matmul %8, %0, %cst_7 {dimension_numbers = #tpu.dot_dimension_numbers<[1], [0], [0], [1], [0, 0, 1, 1], [], []>} : vector<4x48xbf16>, vector<48x768xbf16>, vector<4x768xf32> -> vector<4x768xf32>
    %c18_i32 = arith.constant 18 : i32
    %10 = tpu.dynamic_rotate %9 by %c18_i32 dim 1 : vector<4x768xf32>, i32 -> vector<4x768xf32>
    %11 = arith.addf %6, %10 : vector<4x768xf32>
    %c2 = arith.constant 2 : index
    %c0_8 = arith.constant 0 : index
    %c0_9 = arith.constant 0 : index
    %12 = vector.load %arg1[%c2, %c0_8, %c0_9] : memref<9x4x48xbf16, #tpu.memory_space<vmem>>, vector<1x4x48xbf16>
    %13 = vector.shape_cast %12 : vector<1x4x48xbf16> to vector<4x48xbf16>
    %cst_10 = arith.constant dense<0.000000e+00> : vector<4x768xf32>
    %14 = tpu.matmul %13, %0, %cst_10 {dimension_numbers = #tpu.dot_dimension_numbers<[1], [0], [0], [1], [0, 0, 1, 1], [], []>} : vector<4x48xbf16>, vector<48x768xbf16>, vector<4x768xf32> -> vector<4x768xf32>
    %c17_i32 = arith.constant 17 : i32
    %15 = tpu.dynamic_rotate %14 by %c17_i32 dim 1 : vector<4x768xf32>, i32 -> vector<4x768xf32>
    %16 = arith.addf %11, %15 : vector<4x768xf32>
    %c3 = arith.constant 3 : index
    %c0_11 = arith.constant 0 : index
    %c0_12 = arith.constant 0 : index
    %17 = vector.load %arg1[%c3, %c0_11, %c0_12] : memref<9x4x48xbf16, #tpu.memory_space<vmem>>, vector<1x4x48xbf16>
    %18 = vector.shape_cast %17 : vector<1x4x48xbf16> to vector<4x48xbf16>
    %cst_13 = arith.constant dense<0.000000e+00> : vector<4x768xf32>
    %19 = tpu.matmul %18, %0, %cst_13 {dimension_numbers = #tpu.dot_dimension_numbers<[1], [0], [0], [1], [0, 0, 1, 1], [], []>} : vector<4x48xbf16>, vector<48x768xbf16>, vector<4x768xf32> -> vector<4x768xf32>
    %c1_i32 = arith.constant 1 : i32
    %20 = tpu.dynamic_rotate %19 by %c1_i32 dim 1 : vector<4x768xf32>, i32 -> vector<4x768xf32>
    %21 = arith.addf %16, %20 : vector<4x768xf32>
    %c4 = arith.constant 4 : index
    %c0_14 = arith.constant 0 : index
    %c0_15 = arith.constant 0 : index
    %22 = vector.load %arg1[%c4, %c0_14, %c0_15] : memref<9x4x48xbf16, #tpu.memory_space<vmem>>, vector<1x4x48xbf16>
    %23 = vector.shape_cast %22 : vector<1x4x48xbf16> to vector<4x48xbf16>
    %cst_16 = arith.constant dense<0.000000e+00> : vector<4x768xf32>
    %24 = tpu.matmul %23, %0, %cst_16 {dimension_numbers = #tpu.dot_dimension_numbers<[1], [0], [0], [1], [0, 0, 1, 1], [], []>} : vector<4x48xbf16>, vector<48x768xbf16>, vector<4x768xf32> -> vector<4x768xf32>
    %25 = arith.addf %21, %24 : vector<4x768xf32>
    %c5 = arith.constant 5 : index
    %c0_17 = arith.constant 0 : index
    %c0_18 = arith.constant 0 : index
    %26 = vector.load %arg1[%c5, %c0_17, %c0_18] : memref<9x4x48xbf16, #tpu.memory_space<vmem>>, vector<1x4x48xbf16>
    %27 = vector.shape_cast %26 : vector<1x4x48xbf16> to vector<4x48xbf16>
    %cst_19 = arith.constant dense<0.000000e+00> : vector<4x768xf32>
    %28 = tpu.matmul %27, %0, %cst_19 {dimension_numbers = #tpu.dot_dimension_numbers<[1], [0], [0], [1], [0, 0, 1, 1], [], []>} : vector<4x48xbf16>, vector<48x768xbf16>, vector<4x768xf32> -> vector<4x768xf32>
    %c767_i32 = arith.constant 767 : i32
    %29 = tpu.dynamic_rotate %28 by %c767_i32 dim 1 : vector<4x768xf32>, i32 -> vector<4x768xf32>
    %30 = arith.addf %25, %29 : vector<4x768xf32>
    %c6 = arith.constant 6 : index
    %c0_20 = arith.constant 0 : index
    %c0_21 = arith.constant 0 : index
    %31 = vector.load %arg1[%c6, %c0_20, %c0_21] : memref<9x4x48xbf16, #tpu.memory_space<vmem>>, vector<1x4x48xbf16>
    %32 = vector.shape_cast %31 : vector<1x4x48xbf16> to vector<4x48xbf16>
    %cst_22 = arith.constant dense<0.000000e+00> : vector<4x768xf32>
    %33 = tpu.matmul %32, %0, %cst_22 {dimension_numbers = #tpu.dot_dimension_numbers<[1], [0], [0], [1], [0, 0, 1, 1], [], []>} : vector<4x48xbf16>, vector<48x768xbf16>, vector<4x768xf32> -> vector<4x768xf32>
    %c751_i32 = arith.constant 751 : i32
    %34 = tpu.dynamic_rotate %33 by %c751_i32 dim 1 : vector<4x768xf32>, i32 -> vector<4x768xf32>
    %35 = arith.addf %30, %34 : vector<4x768xf32>
    %c7 = arith.constant 7 : index
    %c0_23 = arith.constant 0 : index
    %c0_24 = arith.constant 0 : index
    %36 = vector.load %arg1[%c7, %c0_23, %c0_24] : memref<9x4x48xbf16, #tpu.memory_space<vmem>>, vector<1x4x48xbf16>
    %37 = vector.shape_cast %36 : vector<1x4x48xbf16> to vector<4x48xbf16>
    %cst_25 = arith.constant dense<0.000000e+00> : vector<4x768xf32>
    %38 = tpu.matmul %37, %0, %cst_25 {dimension_numbers = #tpu.dot_dimension_numbers<[1], [0], [0], [1], [0, 0, 1, 1], [], []>} : vector<4x48xbf16>, vector<48x768xbf16>, vector<4x768xf32> -> vector<4x768xf32>
    %c750_i32 = arith.constant 750 : i32
    %39 = tpu.dynamic_rotate %38 by %c750_i32 dim 1 : vector<4x768xf32>, i32 -> vector<4x768xf32>
    %40 = arith.addf %35, %39 : vector<4x768xf32>
    %c8 = arith.constant 8 : index
    %c0_26 = arith.constant 0 : index
    %c0_27 = arith.constant 0 : index
    %41 = vector.load %arg1[%c8, %c0_26, %c0_27] : memref<9x4x48xbf16, #tpu.memory_space<vmem>>, vector<1x4x48xbf16>
    %42 = vector.shape_cast %41 : vector<1x4x48xbf16> to vector<4x48xbf16>
    %cst_28 = arith.constant dense<0.000000e+00> : vector<4x768xf32>
    %43 = tpu.matmul %42, %0, %cst_28 {dimension_numbers = #tpu.dot_dimension_numbers<[1], [0], [0], [1], [0, 0, 1, 1], [], []>} : vector<4x48xbf16>, vector<48x768xbf16>, vector<4x768xf32> -> vector<4x768xf32>
    %c749_i32 = arith.constant 749 : i32
    %44 = tpu.dynamic_rotate %43 by %c749_i32 dim 1 : vector<4x768xf32>, i32 -> vector<4x768xf32>
    %45 = arith.addf %40, %44 : vector<4x768xf32>
    %cst_29 = arith.constant 0.000000e+00 : f32
    %46 = vector.broadcast %cst_29 : f32 to vector<4x768xf32>
    %47 = arith.maximumf %45, %46 : vector<4x768xf32>
    %c0_30 = arith.constant 0 : index
    %c0_31 = arith.constant 0 : index
    %48 = vector.load %arg3[%c0_30, %c0_31] : memref<4x768xf32, #tpu.memory_space<vmem>>, vector<4x768xf32>
    tpu.vector_store %arg3[%c0_30, %c0_31], %47 {strides = array<i32>} : memref<4x768xf32, #tpu.memory_space<vmem>>, vector<4x768xf32>,
    return
  }
  func.func @transform_0(%arg0: i32) -> (i32, i32, i32) {
    %c0_i32 = arith.constant 0 : i32
    %c0_i32_0 = arith.constant 0 : i32
    %c0_i32_1 = arith.constant 0 : i32
    %c0_i32_2 = arith.constant 0 : i32
    return %c0_i32, %c0_i32_0, %c0_i32_1 : i32, i32, i32
  }
  func.func @transform_1(%arg0: i32) -> (i32, i32) {
    %c0_i32 = arith.constant 0 : i32
    %c0_i32_0 = arith.constant 0 : i32
    %c0_i32_1 = arith.constant 0 : i32
    return %c0_i32, %c0_i32_0 : i32, i32
  }
  func.func @transform_2(%arg0: i32) -> (i32, i32) {
    %c0_i32 = arith.constant 0 : i32
    %c0_i32_0 = arith.constant 0 : i32
    %c0_i32_1 = arith.constant 0 : i32
    return %c0_i32, %c0_i32_0 : i32, i32
  }
}

</mosaic_0001>

<bundles_post_ra>
// kernel: tpu_custom_call.1
= control target key start
LH: loop header
LB: loop body
LE: loop exit
PB: predicated region body
PF: predicated region fallthrough
CT: control target
= control target key end

     0   :  { %7 = vsyncpa [#allocation3], 0  ;;  %s1864_s0 = inlined_call_operand.hbm [shape: bf16[9,4,48], index: 0, kind: input, shape index: {}]   ;;  %s1865_s1 = inlined_call_operand.hbm [shape: bf16[48,768], index: 1, kind: input, shape index: {}]   ;;  %s1866_s2 = inlined_call_operand.hbm [shape: f32[4,768], index: 2, kind: output, shape index: {}]  }
   0x1   :  { %8 = vsyncpa [#allocation6], 0 }
   0x2   :  { %9 = vsyncpa [#allocation4], 0  ;;  %s14_s11 = sshll.u32 %s1864_s0, 4  ;;  %s1388_s12 = smov [#allocation2]   ;;  %s15_s11 = int_to_ptr.hbm [resolvable:$true] %s14_s11 }
   0x3   :  { %s16_s13 = sshll.u32 %s1388_s12, 4  ;;  %s27_s16 = sshll.u32 %s1865_s1, 4  ;;  %s17_s13 = int_to_ptr.vmem [resolvable:$true] %s16_s13  ;;  %s28_s16 = int_to_ptr.hbm [resolvable:$true] %s27_s16 }
   0x4   :  { %s1389_s17 = smov 32   ;;  %s1390_s18 = smov 2  }
   0x5   :  { %22 = dma.hbm_to_vmem [thread:$0]  %s15_s11, 288, %s17_s13, [#allocation3], %s1389_s17, %s1389_s17, %s1390_s18  }
   0x6   :  { %s1391_s19 = smov [#allocation5]   ;;  %s1392_s21 = smov 384  }
   0x7   :  { %s29_s20 = sshll.u32 %s1391_s19, 4  ;;  %s1393_s22 = smov 24   ;;  %s30_s20 = int_to_ptr.vmem [resolvable:$true] %s29_s20 }
   0x8   :  { %35 = dma.hbm_to_vmem [thread:$0]  %s28_s16, 2304, %s30_s20, [#allocation6], %s1392_s21, %s1392_s21, %s1393_s22  }
   0x9   :  { %1382 = dma.done.wait [#allocation3], 288  }
   0xa   :  { %1383 = vsyncadd [#allocation3], 4294967008 }
   0xb   :  { %1384 = dma.done.wait [#allocation6], 2304  }
   0xc   :  { %1385 = vsyncadd [#allocation6], 4294964992  ;;  %v1201_v0 = vld [vmem:[#allocation5 + $0x60] sm:$0xf]  ;;  %v1292_v1 = vld [vmem:[#allocation5 + $0x74] sm:$0xf0] }
   0xd   :  { %v1289_v2 = vld [vmem:[#allocation5 + $0x64] sm:$0xf]  ;;  %v1424_v3 = vor.u32 %v1292_v1, %v1201_v0  ;;  %v1203_v4 = vld [vmem:[#allocation5 + $0x78] sm:$0xf0]  ;;  %v1209_v5 = vld [vmem:[#allocation5 + $0x68] sm:$0xf] }
   0xe   :  { %v1293_v6 = vld [vmem:[#allocation5 + $0x7c] sm:$0xf0]  ;;  %v1426_v7 = vor.u32 %v1289_v2, %v1203_v4  ;;  %v1290_v9 = vld [vmem:[#allocation5 + $0x6c] sm:$0xf]  ;;  %v1211_v10 = vld [vmem:[#allocation5 + $0x80] sm:$0xf0] }
   0xf   :  { %v1428_v8 = vor.u32 %v1293_v6, %v1209_v5  ;;  %v1177_v11 = vld [vmem:[#allocation5 + $0x30] sm:$0xf]  ;;  %163 = vmatpush.bf16.msra.mxu0 %v1424_v3  ;;  %v1431_v12 = vor.u32 %v1290_v9, %v1211_v10  ;;  %v1286_v13 = vld [vmem:[#allocation5 + $0x44] sm:$0xf0]  ;;  %v1283_v14 = vld [vmem:[#allocation5 + $0x34] sm:$0xf] }
  0x10   :  { %v1179_v15 = vld [vmem:[#allocation5 + $0x48] sm:$0xf0]  ;;  %176 = vmatpush.bf16.msra.mxu1 %v1426_v7  ;;  %v1435_v16 = vor.u32 %v1286_v13, %v1177_v11  ;;  %v1185_v18 = vld [vmem:[#allocation5 + $0x38] sm:$0xf]  ;;  %v1287_v19 = vld [vmem:[#allocation5 + $0x4c] sm:$0xf0] }
  0x11   :  { %189 = vmatpush.bf16.msra.mxu2 %v1428_v8  ;;  %v1437_v17 = vor.u32 %v1283_v14, %v1179_v15  ;;  %v1284_v20 = vld [vmem:[#allocation5 + $0x3c] sm:$0xf]  ;;  %202 = vmatpush.bf16.msra.mxu3 %v1431_v12  ;;  %v1440_v21 = vor.u32 %v1287_v19, %v1185_v18  ;;  %v1187_v22 = vld [vmem:[#allocation5 + $0x50] sm:$0xf0]  ;;  %v1153_v23 = vld [vmem:[#allocation5] sm:$0xf] }
  0x12   :  { %v1280_v24 = vld [vmem:[#allocation5 + $0x14] sm:$0xf0]  ;;  %v1442_v25 = vor.u32 %v1284_v20, %v1187_v22  ;;  %v1277_v26 = vld [vmem:[#allocation5 + $0x4] sm:$0xf]  ;;  %v1155_v27 = vld [vmem:[#allocation5 + $0x18] sm:$0xf0] }
  0x13   :  { %v1161_v28 = vld [vmem:[#allocation5 + $0x8] sm:$0xf]  ;;  %164 = vmatpush.bf16.msra.mxu0 %v1435_v16  ;;  %v1445_v29 = vor.u32 %v1280_v24, %v1153_v23  ;;  %v1281_v30 = vld [vmem:[#allocation5 + $0x1c] sm:$0xf0]  ;;  %v1278_v31 = vld [vmem:[#allocation5 + $0xc] sm:$0xf]  ;;  %v1449_v33 = vor.u32 %v1277_v26, %v1155_v27 }
  0x14   :  { %v1163_v32 = vld [vmem:[#allocation5 + $0x20] sm:$0xf0]  ;;  %177 = vmatpush.bf16.msra.mxu1 %v1437_v17  ;;  %v1451_v34 = vor.u32 %v1281_v30, %v1161_v28  ;;  %v1217_v35 = vld [vmem:[#allocation5 + $0x70] sm:$0xf]  ;;  %v1294_v36 = vld [vmem:[#allocation5 + $0x84] sm:$0xf0] }
  0x15   :  { %190 = vmatpush.bf16.msra.mxu2 %v1440_v21  ;;  %203 = vmatpush.bf16.msra.mxu3 %v1442_v25  ;;  %v1454_v37 = vor.u32 %v1278_v31, %v1163_v32  ;;  %v1456_v38 = vor.u32 %v1294_v36, %v1217_v35  ;;  %v1291_v39 = vld [vmem:[#allocation5 + $0x74] sm:$0xf]  ;;  %v1219_v40 = vld [vmem:[#allocation5 + $0x88] sm:$0xf0]  ;;  %vm154_vm0 = vcmask 392192   ;;  %s1394_s0 = smov 19  }
  0x16   :  { %v1458_v41 = vor.u32 %v1291_v39, %v1219_v40  ;;  %v1193_v42 = vld [vmem:[#allocation5 + $0x40] sm:$0xf]  ;;  %v1288_v43 = vld [vmem:[#allocation5 + $0x54] sm:$0xf0]  ;;  %v63_v44 = vld [vmem:[#allocation2] sm:$0x3] }
  0x17   :  { %165 = vmatpush.bf16.msra.mxu0 %v1445_v29  ;;  %v1285_v45 = vld [vmem:[#allocation5 + $0x44] sm:$0xf]  ;;  %v1195_v46 = vld [vmem:[#allocation5 + $0x58] sm:$0xf0]  ;;  %v1465_v47 = vor.u32 %v1288_v43, %v1193_v42  ;;  %v1169_v49 = vld [vmem:[#allocation5 + $0x10] sm:$0xf] }
  0x18   :  { %178 = vmatpush.bf16.msra.mxu1 %v1449_v33  ;;  %v1469_v48 = vor.u32 %v1285_v45, %v1195_v46  ;;  %v1282_v50 = vld [vmem:[#allocation5 + $0x24] sm:$0xf0]  ;;  %v1279_v51 = vld [vmem:[#allocation5 + $0x14] sm:$0xf]  ;;  %v1171_v52 = vld [vmem:[#allocation5 + $0x28] sm:$0xf0] }
  0x19   :  { %191 = vmatpush.bf16.msra.mxu2 %v1451_v34  ;;  %204 = vmatpush.bf16.msra.mxu3 %v1454_v37  ;;  %v1477_v53 = vor.u32 %v1282_v50, %v1169_v49  ;;  %v1480_v54 = vor.u32 %v1279_v51, %v1171_v52  ;;  %v264_v55 = vld [vmem:[#allocation2 + $0x2] sm:$0x3]  ;;  %v372_v56 = vld [vmem:[#allocation2 + $0x4] sm:$0x3]  ;;  %v480_v57 = vld [vmem:[#allocation2 + $0x6] sm:$0x3] }
  0x1a   :  { %1223 = vmatmul.msk.bf16.vlgmr.msra.gmra.mxu0 %vm154_vm0, %v63_v44  ;;  %v588_v58 = vld [vmem:[#allocation2 + $0x8] sm:$0x3]  ;;  %v677_v59 = vld [vmem:[#allocation2 + $0xa] sm:$0x3]  ;;  %v785_v6 = vld [vmem:[#allocation2 + $0xc] sm:$0x3] }
  0x1b   :  { %215 = vmatpush.bf16.msrb.mxu0 %v1456_v38  ;;  %1224 = vmatmul.msk.bf16.vlgmr.msra.gmra.mxu1 %vm154_vm0, %v63_v44  ;;  %s1395_s1 = smov 18   ;;  %v893_v22 = vld [vmem:[#allocation2 + $0xe] sm:$0x3]  ;;  %s1396_s23 = smov 17   ;;  %v1001_v31 = vld [vmem:[#allocation2 + $0x10] sm:$0x3] }
  0x1c   :  { %228 = vmatpush.bf16.msrb.mxu1 %v1458_v41  ;;  %1225 = vmatmul.msk.bf16.vlgmr.msra.gmra.mxu2 %vm154_vm0, %v63_v44  ;;  %s1397_s24 = smov 1   ;;  %s1398_s25 = smov 127   ;;  %vm1123_vm9 = vcmask 1043456  }
  0x1d   :  { %1226 = vmatmul.msk.bf16.vlgmr.msra.gmra.mxu3 %vm154_vm0, %v63_v44  ;;  %273 = vmatpush.bf16.msrb.mxu2 %v1424_v3  ;;  %s1399_s26 = smov 111   ;;  %s1400_s27 = smov 110  }
  0x1e   :  { %286 = vmatpush.bf16.msrb.mxu3 %v1426_v7  ;;  %s1401_s28 = smov 109   ;;  %s1402_s29 = smov [#allocation7]  }
  0x1f   :  { %216 = vmatpush.bf16.msrb.mxu0 %v1465_v47  ;;  %s1138_s30 = sshll.u32 %s1402_s29, 4  ;;  %s1140_s5 = sshll.u32 %s1866_s2, 4  ;;  %s1139_s30 = int_to_ptr.vmem [resolvable:$true] %s1138_s30  ;;  %s1141_s5 = int_to_ptr.hbm [resolvable:$true] %s1140_s5 }
  0x20   :  { %229 = vmatpush.bf16.msrb.mxu1 %v1469_v48 }
  0x21   :  { %274 = vmatpush.bf16.msrb.mxu2 %v1435_v16 }
  0x22   :  { %287 = vmatpush.bf16.msrb.mxu3 %v1437_v17 }
  0x23   :  { %217 = vmatpush.bf16.msrb.mxu0 %v1477_v53 }
  0x24   :  { %230 = vmatpush.bf16.msrb.mxu1 %v1480_v54 }
  0x25   :  { %275 = vmatpush.bf16.msrb.mxu2 %v1445_v29 }
  0x26   :  { %288 = vmatpush.bf16.msrb.mxu3 %v1449_v33 }
  0x27   :  { %299 = vmatpush.bf16.msra.mxu0 %v1428_v8 }
  0x28   :  { %312 = vmatpush.bf16.msra.mxu1 %v1431_v12 }
  0x29   :  { %325 = vmatpush.bf16.msra.mxu2 %v1456_v38 }
  0x2a   :  { %338 = vmatpush.bf16.msra.mxu3 %v1458_v41  ;;  %1227 = vmatmul.msk.bf16.vlgmr.msrb.gmra.mxu0 %vm154_vm0, %v63_v44 }
  0x2b   :  { %300 = vmatpush.bf16.msra.mxu0 %v1440_v21  ;;  %1228 = vmatmul.msk.bf16.vlgmr.msrb.gmra.mxu1 %vm154_vm0, %v63_v44 }
  0x2c   :  { %313 = vmatpush.bf16.msra.mxu1 %v1442_v25  ;;  %1229 = vmatmul.msk.bf16.vlgmr.msrb.gmra.mxu2 %vm154_vm0, %v264_v55 }
  0x2d   :  { %326 = vmatpush.bf16.msra.mxu2 %v1465_v47  ;;  %1230 = vmatmul.msk.bf16.vlgmr.msrb.gmra.mxu3 %vm154_vm0, %v264_v55 }
  0x2e   :  { %339 = vmatpush.bf16.msra.mxu3 %v1469_v48 }
  0x2f   :  { %301 = vmatpush.bf16.msra.mxu0 %v1451_v34 }
  0x30   :  { %314 = vmatpush.bf16.msra.mxu1 %v1454_v37 }
  0x31   :  { %327 = vmatpush.bf16.msra.mxu2 %v1477_v53 }
  0x32   :  { %340 = vmatpush.bf16.msra.mxu3 %v1480_v54 }
  0x33   :  { %381 = vmatpush.bf16.msrb.mxu0 %v1424_v3 }
  0x34   :  { %394 = vmatpush.bf16.msrb.mxu1 %v1426_v7 }
  0x35   :  { %407 = vmatpush.bf16.msrb.mxu2 %v1428_v8 }
  0x36   :  { %420 = vmatpush.bf16.msrb.mxu3 %v1431_v12 }
  0x37   :  { %382 = vmatpush.bf16.msrb.mxu0 %v1435_v16 }
  0x38   :  { %395 = vmatpush.bf16.msrb.mxu1 %v1437_v17 }
  0x39   :  { %408 = vmatpush.bf16.msrb.mxu2 %v1440_v21 }
  0x3a   :  { %421 = vmatpush.bf16.msrb.mxu3 %v1442_v25  ;;  %1231 = vmatmul.msk.bf16.vlgmr.msra.gmra.mxu0 %vm154_vm0, %v264_v55 }
  0x3b   :  { %383 = vmatpush.bf16.msrb.mxu0 %v1445_v29  ;;  %1232 = vmatmul.msk.bf16.vlgmr.msra.gmra.mxu1 %vm154_vm0, %v264_v55 }
  0x3c   :  { %396 = vmatpush.bf16.msrb.mxu1 %v1449_v33  ;;  %1233 = vmatmul.msk.bf16.vlgmr.msra.gmra.mxu2 %vm154_vm0, %v264_v55 }
  0x3d   :  { %409 = vmatpush.bf16.msrb.mxu2 %v1451_v34  ;;  %1234 = vmatmul.msk.bf16.vlgmr.msra.gmra.mxu3 %vm154_vm0, %v264_v55 }
  0x3e   :  { %422 = vmatpush.bf16.msrb.mxu3 %v1454_v37 }
  0x3f   :  { %433 = vmatpush.bf16.msra.mxu0 %v1456_v38 }
  0x40   :  { %446 = vmatpush.bf16.msra.mxu1 %v1458_v41 }
  0x41   :  { %489 = vmatpush.bf16.msra.mxu2 %v1424_v3 }
  0x42   :  { %502 = vmatpush.bf16.msra.mxu3 %v1426_v7 }
  0x43   :  { %434 = vmatpush.bf16.msra.mxu0 %v1465_v47 }
  0x44   :  { %447 = vmatpush.bf16.msra.mxu1 %v1469_v48 }
  0x45   :  { %490 = vmatpush.bf16.msra.mxu2 %v1435_v16 }
  0x46   :  { %503 = vmatpush.bf16.msra.mxu3 %v1437_v17 }
  0x47   :  { %435 = vmatpush.bf16.msra.mxu0 %v1477_v53 }
  0x48   :  { %448 = vmatpush.bf16.msra.mxu1 %v1480_v54 }
  0x49   :  { %491 = vmatpush.bf16.msra.mxu2 %v1445_v29 }
  0x4a   :  { %504 = vmatpush.bf16.msra.mxu3 %v1449_v33  ;;  %1235 = vmatmul.msk.bf16.vlgmr.msrb.gmra.mxu0 %vm154_vm0, %v372_v56 }
  0x4b   :  { %1236 = vmatmul.msk.bf16.vlgmr.msrb.gmra.mxu1 %vm154_vm0, %v372_v56  ;;  %515 = vmatpush.bf16.msrb.mxu0 %v1428_v8 }
  0x4c   :  { %1237 = vmatmul.msk.bf16.vlgmr.msrb.gmra.mxu2 %vm154_vm0, %v372_v56  ;;  %528 = vmatpush.bf16.msrb.mxu1 %v1431_v12 }
  0x4d   :  { %1238 = vmatmul.msk.bf16.vlgmr.msrb.gmra.mxu3 %vm154_vm0, %v372_v56  ;;  %541 = vmatpush.bf16.msrb.mxu2 %v1456_v38 }
  0x4e   :  { %554 = vmatpush.bf16.msrb.mxu3 %v1458_v41 }
  0x4f   :  { %516 = vmatpush.bf16.msrb.mxu0 %v1440_v21 }
  0x50   :  { %529 = vmatpush.bf16.msrb.mxu1 %v1442_v25 }
  0x51   :  { %542 = vmatpush.bf16.msrb.mxu2 %v1465_v47 }
  0x52   :  { %555 = vmatpush.bf16.msrb.mxu3 %v1469_v48 }
  0x53   :  { %517 = vmatpush.bf16.msrb.mxu0 %v1451_v34 }
  0x54   :  { %530 = vmatpush.bf16.msrb.mxu1 %v1454_v37 }
  0x55   :  { %543 = vmatpush.bf16.msrb.mxu2 %v1477_v53 }
  0x56   :  { %556 = vmatpush.bf16.msrb.mxu3 %v1480_v54 }
  0x5a   :  { %1239 = vmatmul.msk.bf16.vlgmr.msra.gmra.mxu0 %vm154_vm0, %v372_v56 }
  0x5b   :  { %1240 = vmatmul.msk.bf16.vlgmr.msra.gmra.mxu1 %vm154_vm0, %v372_v56  ;;  %597 = vmatpush.bf16.msra.mxu0 %v1424_v3 }
  0x5c   :  { %1241 = vmatmul.msk.bf16.vlgmr.msra.gmra.mxu2 %vm154_vm0, %v480_v57  ;;  %610 = vmatpush.bf16.msra.mxu1 %v1426_v7 }
  0x5d   :  { %1242 = vmatmul.msk.bf16.vlgmr.msra.gmra.mxu3 %vm154_vm0, %v480_v57  ;;  %623 = vmatpush.bf16.msra.mxu2 %v1428_v8 }
  0x5e   :  { %636 = vmatpush.bf16.msra.mxu3 %v1431_v12 }
  0x5f   :  { %598 = vmatpush.bf16.msra.mxu0 %v1435_v16 }
  0x60   :  { %611 = vmatpush.bf16.msra.mxu1 %v1437_v17 }
  0x61   :  { %624 = vmatpush.bf16.msra.mxu2 %v1440_v21 }
  0x62   :  { %637 = vmatpush.bf16.msra.mxu3 %v1442_v25 }
  0x63   :  { %599 = vmatpush.bf16.msra.mxu0 %v1445_v29 }
  0x64   :  { %612 = vmatpush.bf16.msra.mxu1 %v1449_v33 }
  0x65   :  { %625 = vmatpush.bf16.msra.mxu2 %v1451_v34 }
  0x66   :  { %638 = vmatpush.bf16.msra.mxu3 %v1454_v37 }
  0x6a   :  { %1243 = vmatmul.msk.bf16.vlgmr.msrb.gmra.mxu0 %vm154_vm0, %v480_v57 }
  0x6b   :  { %1244 = vmatmul.msk.bf16.vlgmr.msrb.gmra.mxu1 %vm154_vm0, %v480_v57  ;;  %649 = vmatpush.bf16.msrb.mxu0 %v1456_v38 }
  0x6c   :  { %1245 = vmatmul.msk.bf16.vlgmr.msrb.gmra.mxu2 %vm154_vm0, %v480_v57  ;;  %662 = vmatpush.bf16.msrb.mxu1 %v1458_v41 }
  0x6d   :  { %1246 = vmatmul.msk.bf16.vlgmr.msrb.gmra.mxu3 %vm154_vm0, %v480_v57  ;;  %686 = vmatpush.bf16.msrb.mxu2 %v1424_v3 }
  0x6e   :  { %699 = vmatpush.bf16.msrb.mxu3 %v1426_v7 }
  0x6f   :  { %650 = vmatpush.bf16.msrb.mxu0 %v1465_v47 }
  0x70   :  { %663 = vmatpush.bf16.msrb.mxu1 %v1469_v48 }
  0x71   :  { %687 = vmatpush.bf16.msrb.mxu2 %v1435_v16 }
  0x72   :  { %700 = vmatpush.bf16.msrb.mxu3 %v1437_v17 }
  0x73   :  { %651 = vmatpush.bf16.msrb.mxu0 %v1477_v53 }
  0x74   :  { %664 = vmatpush.bf16.msrb.mxu1 %v1480_v54 }
  0x75   :  { %688 = vmatpush.bf16.msrb.mxu2 %v1445_v29 }
  0x76   :  { %701 = vmatpush.bf16.msrb.mxu3 %v1449_v33 }
  0x7a   :  { %1247 = vmatmul.msk.bf16.vlgmr.msra.gmra.mxu0 %vm154_vm0, %v588_v58 }
  0x7b   :  { %1248 = vmatmul.msk.bf16.vlgmr.msra.gmra.mxu1 %vm154_vm0, %v588_v58  ;;  %712 = vmatpush.bf16.msra.mxu0 %v1428_v8 }
  0x7c   :  { %1249 = vmatmul.msk.bf16.vlgmr.msra.gmra.mxu2 %vm154_vm0, %v588_v58  ;;  %725 = vmatpush.bf16.msra.mxu1 %v1431_v12 }
  0x7d   :  { %1250 = vmatmul.msk.bf16.vlgmr.msra.gmra.mxu3 %vm154_vm0, %v588_v58  ;;  %738 = vmatpush.bf16.msra.mxu2 %v1456_v38 }
  0x7e   :  { %751 = vmatpush.bf16.msra.mxu3 %v1458_v41 }
  0x7f   :  { %713 = vmatpush.bf16.msra.mxu0 %v1440_v21 }
  0x80   :  { %726 = vmatpush.bf16.msra.mxu1 %v1442_v25 }
  0x81   :  { %739 = vmatpush.bf16.msra.mxu2 %v1465_v47 }
  0x82   :  { %752 = vmatpush.bf16.msra.mxu3 %v1469_v48 }
  0x83   :  { %714 = vmatpush.bf16.msra.mxu0 %v1451_v34 }
  0x84   :  { %727 = vmatpush.bf16.msra.mxu1 %v1454_v37 }
  0x85   :  { %740 = vmatpush.bf16.msra.mxu2 %v1477_v53 }
  0x86   :  { %753 = vmatpush.bf16.msra.mxu3 %v1480_v54 }
  0x8a   :  { %1251 = vmatmul.msk.bf16.vlgmr.msrb.gmra.mxu0 %vm154_vm0, %v588_v58 }
  0x8b   :  { %1252 = vmatmul.msk.bf16.vlgmr.msrb.gmra.mxu1 %vm154_vm0, %v588_v58  ;;  %794 = vmatpush.bf16.msrb.mxu0 %v1424_v3 }
  0x8c   :  { %1253 = vmatmul.msk.bf16.vlgmr.msrb.gmra.mxu2 %vm154_vm0, %v677_v59  ;;  %807 = vmatpush.bf16.msrb.mxu1 %v1426_v7 }
  0x8d   :  { %1254 = vmatmul.msk.bf16.vlgmr.msrb.gmra.mxu3 %vm154_vm0, %v677_v59  ;;  %820 = vmatpush.bf16.msrb.mxu2 %v1428_v8 }
  0x8e   :  { %833 = vmatpush.bf16.msrb.mxu3 %v1431_v12 }
  0x8f   :  { %795 = vmatpush.bf16.msrb.mxu0 %v1435_v16 }
  0x90   :  { %808 = vmatpush.bf16.msrb.mxu1 %v1437_v17 }
  0x91   :  { %821 = vmatpush.bf16.msrb.mxu2 %v1440_v21 }
  0x92   :  { %834 = vmatpush.bf16.msrb.mxu3 %v1442_v25 }
  0x93   :  { %796 = vmatpush.bf16.msrb.mxu0 %v1445_v29 }
  0x94   :  { %809 = vmatpush.bf16.msrb.mxu1 %v1449_v33 }
  0x95   :  { %822 = vmatpush.bf16.msrb.mxu2 %v1451_v34 }
  0x96   :  { %835 = vmatpush.bf16.msrb.mxu3 %v1454_v37 }
  0x97   :  { %v167_v60 = vpop.f32.mrf.mxu0 }
  0x98   :  { %v180_v61 = vpop.f32.mrf.mxu1  ;;  %236 = vrot.lane.b32.xlu0 %v167_v60, %s1394_s0 }
  0x9a   :  { %1255 = vmatmul.msk.bf16.vlgmr.msra.gmra.mxu0 %vm154_vm0, %v677_v59 }
  0x9b   :  { %1256 = vmatmul.msk.bf16.vlgmr.msra.gmra.mxu1 %vm154_vm0, %v677_v59  ;;  %846 = vmatpush.bf16.msra.mxu0 %v1456_v38 }
  0x9c   :  { %1257 = vmatmul.msk.bf16.vlgmr.msra.gmra.mxu2 %vm154_vm0, %v677_v59  ;;  %859 = vmatpush.bf16.msra.mxu1 %v1458_v41 }
  0x9d   :  { %1258 = vmatmul.msk.bf16.vlgmr.msra.gmra.mxu3 %vm154_vm0, %v677_v59  ;;  %902 = vmatpush.bf16.msra.mxu2 %v1424_v3 }
  0x9e   :  { %915 = vmatpush.bf16.msra.mxu3 %v1426_v7 }
  0x9f   :  { %v193_v62 = vpop.f32.mrf.mxu2  ;;  %v169_v0 = vpop.f32.mrf.mxu0  ;;  %847 = vmatpush.bf16.msra.mxu0 %v1465_v47 }
  0xa0   :  { %v206_v63 = vpop.f32.mrf.mxu3  ;;  %240 = vrot.lane.b32.xlu1 %v193_v62, %s1394_s0  ;;  %v182_v1 = vpop.f32.mrf.mxu1  ;;  %238 = vrot.lane.b32.xlu0 %v180_v61, %s1394_s0 }
  0xa1   :  { %860 = vmatpush.bf16.msra.mxu1 %v1469_v48  ;;  %903 = vmatpush.bf16.msra.mxu2 %v1435_v16 }
  0xa2   :  { %916 = vmatpush.bf16.msra.mxu3 %v1437_v17 }
  0xa3   :  { %848 = vmatpush.bf16.msra.mxu0 %v1477_v53 }
  0xa5   :  { %861 = vmatpush.bf16.msra.mxu1 %v1480_v54  ;;  %904 = vmatpush.bf16.msra.mxu2 %v1445_v29 }
  0xa6   :  { %917 = vmatpush.bf16.msra.mxu3 %v1449_v33 }
  0xa7   :  { %v195_v2 = vpop.f32.mrf.mxu2  ;;  %v219_v5 = vpop.f32.mrf.mxu0 }
  0xa8   :  { %v208_v4 = vpop.f32.mrf.mxu3  ;;  %242 = vrot.lane.b32.xlu1 %v206_v63, %s1394_s0  ;;  %v232_v9 = vpop.f32.mrf.mxu1  ;;  %244 = vrot.lane.b32.xlu2 %v219_v5, %s1394_s0 }
  0xaa   :  { %1259 = vmatmul.msk.bf16.vlgmr.msrb.gmra.mxu0 %vm154_vm0, %v785_v6 }
  0xab   :  { %1260 = vmatmul.msk.bf16.vlgmr.msrb.gmra.mxu1 %vm154_vm0, %v785_v6  ;;  %928 = vmatpush.bf16.msrb.mxu0 %v1428_v8 }
  0xac   :  { %1261 = vmatmul.msk.bf16.vlgmr.msrb.gmra.mxu2 %vm154_vm0, %v785_v6  ;;  %941 = vmatpush.bf16.msrb.mxu1 %v1431_v12 }
  0xad   :  { %1262 = vmatmul.msk.bf16.vlgmr.msrb.gmra.mxu3 %vm154_vm0, %v785_v6  ;;  %954 = vmatpush.bf16.msrb.mxu2 %v1456_v38 }
  0xae   :  { %967 = vmatpush.bf16.msrb.mxu3 %v1458_v41 }
  0xaf   :  { %v277_v10 = vpop.f32.mrf.mxu2  ;;  %v221_v13 = vpop.f32.mrf.mxu0  ;;  %929 = vmatpush.bf16.msrb.mxu0 %v1440_v21 }
  0xb0   :  { %v290_v11 = vpop.f32.mrf.mxu3  ;;  %346 = vrot.lane.b32.xlu0 %v277_v10, %s1395_s1  ;;  %v234_v14 = vpop.f32.mrf.mxu1  ;;  %246 = vrot.lane.b32.xlu2 %v232_v9, %s1394_s0 }
  0xb1   :  { %348 = vrot.lane.b32.xlu1 %v290_v11, %s1395_s1  ;;  %942 = vmatpush.bf16.msrb.mxu1 %v1442_v25 }
  0xb2   :  { %955 = vmatpush.bf16.msrb.mxu2 %v1465_v47  ;;  %968 = vmatpush.bf16.msrb.mxu3 %v1469_v48 }
  0xb3   :  { %930 = vmatpush.bf16.msrb.mxu0 %v1451_v34 }
  0xb5   :  { %943 = vmatpush.bf16.msrb.mxu1 %v1454_v37 }
  0xb6   :  { %956 = vmatpush.bf16.msrb.mxu2 %v1477_v53  ;;  %969 = vmatpush.bf16.msrb.mxu3 %v1480_v54 }
  0xb7   :  { %v279_v15 = vpop.f32.mrf.mxu2  ;;  %v303_v19 = vpop.f32.mrf.mxu0 }
  0xb8   :  { %v292_v18 = vpop.f32.mrf.mxu3  ;;  %v316_v20 = vpop.f32.mrf.mxu1  ;;  %350 = vrot.lane.b32.xlu2 %v303_v19, %s1395_s1 }
  0xb9   :  { %352 = vrot.lane.b32.xlu0 %v316_v20, %s1395_s1 }
  0xba   :  { %1263 = vmatmul.msk.bf16.vlgmr.msra.gmra.mxu0 %vm154_vm0, %v785_v6 }
  0xbb   :  { %1264 = vmatmul.msk.bf16.vlgmr.msra.gmra.mxu1 %vm154_vm0, %v785_v6  ;;  %1010 = vmatpush.bf16.msra.mxu0 %v1424_v3 }
  0xbc   :  { %1265 = vmatmul.msk.bf16.vlgmr.msra.gmra.mxu2 %vm154_vm0, %v893_v22  ;;  %1023 = vmatpush.bf16.msra.mxu1 %v1426_v7 }
  0xbd   :  { %1266 = vmatmul.msk.bf16.vlgmr.msra.gmra.mxu3 %vm154_vm0, %v893_v22  ;;  %1036 = vmatpush.bf16.msra.mxu2 %v1428_v8 }
  0xbe   :  { %1049 = vmatpush.bf16.msra.mxu3 %v1431_v12 }
  0xbf   :  { %v329_v23 = vpop.f32.mrf.mxu2  ;;  %v305_v26 = vpop.f32.mrf.mxu0  ;;  %1011 = vmatpush.bf16.msra.mxu0 %v1435_v16 }
  0xc0   :  { %v342_v24 = vpop.f32.mrf.mxu3  ;;  %354 = vrot.lane.b32.xlu1 %v329_v23, %s1395_s1  ;;  %v318_v27 = vpop.f32.mrf.mxu1  ;;  %1024 = vmatpush.bf16.msra.mxu1 %v1437_v17 }
  0xc1   :  { %356 = vrot.lane.b32.xlu2 %v342_v24, %s1395_s1  ;;  %1037 = vmatpush.bf16.msra.mxu2 %v1440_v21 }
  0xc2   :  { %1050 = vmatpush.bf16.msra.mxu3 %v1442_v25 }
  0xc3   :  { %1012 = vmatpush.bf16.msra.mxu0 %v1445_v29 }
  0xc4   :  { %1025 = vmatpush.bf16.msra.mxu1 %v1449_v33 }
  0xc5   :  { %1038 = vmatpush.bf16.msra.mxu2 %v1451_v34 }
  0xc6   :  { %1051 = vmatpush.bf16.msra.mxu3 %v1454_v37 }
  0xc7   :  { %v331_v3 = vpop.f32.mrf.mxu2  ;;  %v385_v8 = vpop.f32.mrf.mxu0 }
  0xc8   :  { %v344_v7 = vpop.f32.mrf.mxu3  ;;  %v398_v12 = vpop.f32.mrf.mxu1  ;;  %454 = vrot.lane.b32.xlu0 %v385_v8, %s1396_s23 }
  0xc9   :  { %456 = vrot.lane.b32.xlu1 %v398_v12, %s1396_s23 }
  0xca   :  { %1267 = vmatmul.msk.bf16.vlgmr.msrb.gmra.mxu0 %vm154_vm0, %v893_v22 }
  0xcb   :  { %1268 = vmatmul.msk.bf16.vlgmr.msrb.gmra.mxu1 %vm154_vm0, %v893_v22  ;;  %1062 = vmatpush.bf16.msrb.mxu0 %v1456_v38 }
  0xcc   :  { %1269 = vmatmul.msk.bf16.vlgmr.msrb.gmra.mxu2 %vm154_vm0, %v893_v22  ;;  %1075 = vmatpush.bf16.msrb.mxu1 %v1458_v41 }
  0xcd   :  { %1270 = vmatmul.msk.bf16.vlgmr.msrb.gmra.mxu3 %vm154_vm0, %v893_v22 }
  0xcf   :  { %v411_v16 = vpop.f32.mrf.mxu2  ;;  %v387_v21 = vpop.f32.mrf.mxu0  ;;  %1063 = vmatpush.bf16.msrb.mxu0 %v1465_v47 }
  0xd0   :  { %v424_v17 = vpop.f32.mrf.mxu3  ;;  %458 = vrot.lane.b32.xlu2 %v411_v16, %s1396_s23  ;;  %v400_v25 = vpop.f32.mrf.mxu1  ;;  %1076 = vmatpush.bf16.msrb.mxu1 %v1469_v48 }
  0xd1   :  { %460 = vrot.lane.b32.xlu0 %v424_v17, %s1396_s23 }
  0xd3   :  { %1064 = vmatpush.bf16.msrb.mxu0 %v1477_v53  ;;  %v248_v53 = vlaneseq }
  0xd4   :  { %1077 = vmatpush.bf16.msrb.mxu1 %v1480_v54 }
  0xd5   :  { %v1696_v55 = vand.u32 127, %v248_v53 }
  0xd7   :  { %v413_v28 = vpop.f32.mrf.mxu2  ;;  %v437_v30 = vpop.f32.mrf.mxu0  ;;  %vm250_vm1 = vcmp.lt.s32.totalorder %v1696_v55, 19  ;;  %vm358_vm2 = vcmp.lt.s32.totalorder %v1696_v55, 18  ;;  %vm466_vm3 = vcmp.lt.s32.totalorder %v1696_v55, 17  ;;  %vm574_vm4 = vcmp.lt.s32.totalorder %v1696_v55, 1 }
  0xd8   :  { %v426_v29 = vpop.f32.mrf.mxu3  ;;  %v450_v32 = vpop.f32.mrf.mxu1  ;;  %462 = vrot.lane.b32.xlu1 %v437_v30, %s1396_s23  ;;  %vm771_vm5 = vcmp.lt.s32.totalorder %v1696_v55, 127  ;;  %vm879_vm6 = vcmp.lt.s32.totalorder %v1696_v55, 111  ;;  %vm987_vm7 = vcmp.lt.s32.totalorder %v1696_v55, 110  ;;  %vm1095_vm8 = vcmp.lt.s32.totalorder %v1696_v55, 109 }
  0xd9   :  { %464 = vrot.lane.b32.xlu2 %v450_v32, %s1396_s23 }
  0xda   :  { %1271 = vmatmul.msk.bf16.vlgmr.msra.gmra.mxu0 %vm154_vm0, %v1001_v31 }
  0xdb   :  { %1272 = vmatmul.msk.bf16.vlgmr.msra.gmra.mxu1 %vm154_vm0, %v1001_v31 }
  0xdc   :  { %1273 = vmatmul.msk.bf16.vlgmr.msra.gmra.mxu2 %vm154_vm0, %v1001_v31 }
  0xdd   :  { %1274 = vmatmul.msk.bf16.vlgmr.msra.gmra.mxu3 %vm154_vm0, %v1001_v31 }
  0xdf   :  { %v493_v33 = vpop.f32.mrf.mxu2  ;;  %v439_v35 = vpop.f32.mrf.mxu0 }
  0xe0   :  { %v506_v34 = vpop.f32.mrf.mxu3  ;;  %562 = vrot.lane.b32.xlu0 %v493_v33, %s1397_s24  ;;  %v452_v36 = vpop.f32.mrf.mxu1 }
  0xe1   :  { %564 = vrot.lane.b32.xlu1 %v506_v34, %s1397_s24 }
  0xe7   :  { %v495_v37 = vpop.f32.mrf.mxu2  ;;  %v519_v39 = vpop.f32.mrf.mxu0 }
  0xe8   :  { %v508_v38 = vpop.f32.mrf.mxu3  ;;  %v532_v40 = vpop.f32.mrf.mxu1  ;;  %566 = vrot.lane.b32.xlu2 %v519_v39, %s1397_s24 }
  0xe9   :  { %568 = vrot.lane.b32.xlu0 %v532_v40, %s1397_s24 }
  0xea   :  { %1275 = vmatmul.msk.bf16.vlgmr.msrb.gmra.mxu0 %vm154_vm0, %v1001_v31 }
  0xeb   :  { %1276 = vmatmul.msk.bf16.vlgmr.msrb.gmra.mxu1 %vm154_vm0, %v1001_v31 }
  0xef   :  { %v545_v41 = vpop.f32.mrf.mxu2  ;;  %v521_v43 = vpop.f32.mrf.mxu0 }
  0xf0   :  { %v558_v42 = vpop.f32.mrf.mxu3  ;;  %570 = vrot.lane.b32.xlu1 %v545_v41, %s1397_s24  ;;  %v534_v44 = vpop.f32.mrf.mxu1 }
  0xf1   :  { %572 = vrot.lane.b32.xlu2 %v558_v42, %s1397_s24 }
  0xf7   :  { %v547_v45 = vpop.f32.mrf.mxu2  ;;  %v1688_v47 = vpop.f32.mrf.mxu0 }
  0xf8   :  { %v560_v46 = vpop.f32.mrf.mxu3  ;;  %v1690_v48 = vpop.f32.mrf.mxu1 }
  0xff   :  { %v1692_v49 = vpop.f32.mrf.mxu2  ;;  %v603_v51 = vpop.f32.mrf.mxu0 }
 0x100   :  { %v1694_v50 = vpop.f32.mrf.mxu3  ;;  %v616_v52 = vpop.f32.mrf.mxu1 }
 0x102   :  { %v245_v54 = vpop.permute.xlu2 %244 }
 0x107   :  { %v629_v56 = vpop.f32.mrf.mxu2  ;;  %v1698_v58 = vpop.f32.mrf.mxu0 }
 0x108   :  { %v642_v57 = vpop.f32.mrf.mxu3  ;;  %v1700_v59 = vpop.f32.mrf.mxu1 }
 0x10a   :  { %v237_v60 = vpop.permute.xlu0 %236  ;;  %v247_v61 = vpop.permute.xlu2 %246 }
 0x10b   :  { %v251_v62 = vsel %vm250_vm1, %v245_v54, %v247_v61  ;;  %v256_v63 = vsel %vm250_vm1, %v247_v61, %v237_v60 }
 0x10f   :  { %v690_v0 = vpop.f32.mrf.mxu2  ;;  %v655_v2 = vpop.f32.mrf.mxu0 }
 0x110   :  { %v703_v1 = vpop.f32.mrf.mxu3  ;;  %759 = vrot.lane.b32.xlu0 %v690_v0, %s1398_s25  ;;  %v668_v4 = vpop.f32.mrf.mxu1 }
 0x111   :  { %761 = vrot.lane.b32.xlu1 %v703_v1, %s1398_s25 }
 0x112   :  { %v241_v5 = vpop.permute.xlu1 %240  ;;  %v239_v6 = vpop.permute.xlu0 %238 }
 0x113   :  { %v254_v9 = vsel %vm250_vm1, %v239_v6, %v241_v5  ;;  %v255_v10 = vsel %vm250_vm1, %v237_v60, %v239_v6  ;;  %v351_v11 = vpop.permute.xlu2 %350 }
 0x117   :  { %v692_v13 = vpop.f32.mrf.mxu2  ;;  %v716_v15 = vpop.f32.mrf.mxu0 }
 0x118   :  { %v705_v14 = vpop.f32.mrf.mxu3  ;;  %v729_v18 = vpop.f32.mrf.mxu1  ;;  %763 = vrot.lane.b32.xlu2 %v716_v15, %s1398_s25 }
 0x119   :  { %765 = vrot.lane.b32.xlu0 %v729_v18, %s1398_s25 }
 0x11a   :  { %v243_v19 = vpop.permute.xlu1 %242 }
 0x11b   :  { %v252_v20 = vsel %vm250_vm1, %v243_v19, %v245_v54  ;;  %v253_v22 = vsel %vm250_vm1, %v241_v5, %v243_v19  ;;  %v357_v24 = vpop.permute.xlu2 %356 }
 0x11f   :  { %v742_v23 = vpop.f32.mrf.mxu2  ;;  %v718_v26 = vpop.f32.mrf.mxu0 }
 0x120   :  { %767 = vrot.lane.b32.xlu1 %v742_v23, %s1398_s25  ;;  %v755_v27 = vpop.f32.mrf.mxu3  ;;  %v731_v3 = vpop.f32.mrf.mxu1 }
 0x121   :  { %769 = vrot.lane.b32.xlu2 %v755_v27, %s1398_s25 }
 0x122   :  { %v347_v7 = vpop.permute.xlu0 %346 }
 0x123   :  { %v349_v8 = vpop.permute.xlu1 %348  ;;  %v364_v12 = vsel %vm358_vm2, %v357_v24, %v347_v7 }
 0x124   :  { %v362_v16 = vsel %vm358_vm2, %v349_v8, %v351_v11  ;;  %v363_v17 = vsel %vm358_vm2, %v347_v7, %v349_v8  ;;  %v365_v21 = vadd.f32 %v364_v12, %v256_v63 }
 0x125   :  { %v367_v25 = vadd.f32 %v362_v16, %v254_v9  ;;  %v366_v28 = vadd.f32 %v363_v17, %v255_v10 }
 0x127   :  { %v744_v29 = vpop.f32.mrf.mxu2  ;;  %v798_v31 = vpop.f32.mrf.mxu0 }
 0x128   :  { %v757_v30 = vpop.f32.mrf.mxu3  ;;  %v811_v32 = vpop.f32.mrf.mxu1  ;;  %867 = vrot.lane.b32.xlu0 %v798_v31, %s1399_s26 }
 0x129   :  { %869 = vrot.lane.b32.xlu1 %v811_v32, %s1399_s26 }
 0x12a   :  { %v459_v37 = vpop.permute.xlu2 %458 }
 0x12b   :  { %v353_v33 = vpop.permute.xlu0 %352 }
 0x12c   :  { %v361_v34 = vsel %vm358_vm2, %v351_v11, %v353_v33 }
 0x12d   :  { %v368_v35 = vadd.f32 %v361_v34, %v253_v22 }
 0x12f   :  { %v824_v36 = vpop.f32.mrf.mxu2  ;;  %v800_v38 = vpop.f32.mrf.mxu0 }
 0x130   :  { %v837_v39 = vpop.f32.mrf.mxu3  ;;  %871 = vrot.lane.b32.xlu2 %v824_v36, %s1399_s26  ;;  %v813_v40 = vpop.f32.mrf.mxu1 }
 0x131   :  { %873 = vrot.lane.b32.xlu0 %v837_v39, %s1399_s26 }
 0x132   :  { %v355_v41 = vpop.permute.xlu1 %354 }
 0x133   :  { %v359_v42 = vsel %vm358_vm2, %v355_v41, %v357_v24  ;;  %v360_v43 = vsel %vm358_vm2, %v353_v33, %v355_v41  ;;  %v465_v54 = vpop.permute.xlu2 %464 }
 0x134   :  { %v369_v44 = vadd.f32 %v360_v43, %v252_v20  ;;  %v370_v45 = vadd.f32 %v359_v42, %v251_v62 }
 0x137   :  { %v826_v46 = vpop.f32.mrf.mxu2  ;;  %v850_v52 = vpop.f32.mrf.mxu0 }
 0x138   :  { %v839_v51 = vpop.f32.mrf.mxu3  ;;  %v863_v53 = vpop.f32.mrf.mxu1  ;;  %875 = vrot.lane.b32.xlu1 %v850_v52, %s1399_s26 }
 0x139   :  { %877 = vrot.lane.b32.xlu2 %v863_v53, %s1399_s26 }
 0x13a   :  { %v455_v56 = vpop.permute.xlu0 %454 }
 0x13b   :  { %v457_v57 = vpop.permute.xlu1 %456  ;;  %v472_v60 = vsel %vm466_vm3, %v465_v54, %v455_v56 }
 0x13c   :  { %v470_v61 = vsel %vm466_vm3, %v457_v57, %v459_v37  ;;  %v471_v62 = vsel %vm466_vm3, %v455_v56, %v457_v57  ;;  %v1735_v63 = vadd.f32 %v472_v60, %v365_v21 }
 0x13d   :  { %v1737_v0 = vadd.f32 %v471_v62, %v366_v28  ;;  %v475_v1 = vadd.f32 %v470_v61, %v367_v25 }
 0x13f   :  { %v906_v2 = vpop.f32.mrf.mxu2  ;;  %v852_v4 = vpop.f32.mrf.mxu0 }
 0x140   :  { %975 = vrot.lane.b32.xlu0 %v906_v2, %s1400_s27  ;;  %v919_v5 = vpop.f32.mrf.mxu3  ;;  %v865_v6 = vpop.f32.mrf.mxu1 }
 0x141   :  { %977 = vrot.lane.b32.xlu1 %v919_v5, %s1400_s27 }
 0x142   :  { %v567_v8 = vpop.permute.xlu2 %566 }
 0x143   :  { %v461_v9 = vpop.permute.xlu0 %460 }
 0x144   :  { %v469_v10 = vsel %vm466_vm3, %v459_v37, %v461_v9 }
 0x145   :  { %v476_v11 = vadd.f32 %v469_v10, %v368_v35 }
 0x147   :  { %v908_v13 = vpop.f32.mrf.mxu2  ;;  %v932_v15 = vpop.f32.mrf.mxu0 }
 0x148   :  { %v921_v14 = vpop.f32.mrf.mxu3  ;;  %v945_v18 = vpop.f32.mrf.mxu1  ;;  %979 = vrot.lane.b32.xlu2 %v932_v15, %s1400_s27 }
 0x149   :  { %981 = vrot.lane.b32.xlu0 %v945_v18, %s1400_s27 }
 0x14a   :  { %v463_v19 = vpop.permute.xlu1 %462 }
 0x14b   :  { %v467_v20 = vsel %vm466_vm3, %v463_v19, %v465_v54  ;;  %v468_v22 = vsel %vm466_vm3, %v461_v9, %v463_v19 }
 0x14c   :  { %v1745_v23 = vadd.f32 %v468_v22, %v369_v44  ;;  %v1747_v24 = vadd.f32 %v467_v20, %v370_v45  ;;  %v573_v44 = vpop.permute.xlu2 %572 }
 0x14f   :  { %v958_v26 = vpop.f32.mrf.mxu2  ;;  %v934_v27 = vpop.f32.mrf.mxu0 }
 0x150   :  { %983 = vrot.lane.b32.xlu1 %v958_v26, %s1400_s27  ;;  %v971_v3 = vpop.f32.mrf.mxu3  ;;  %v947_v7 = vpop.f32.mrf.mxu1 }
 0x151   :  { %985 = vrot.lane.b32.xlu2 %v971_v3, %s1400_s27 }
 0x152   :  { %v563_v16 = vpop.permute.xlu0 %562 }
 0x153   :  { %v565_v12 = vpop.permute.xlu1 %564  ;;  %v580_v9 = vsel %vm574_vm4, %v573_v44, %v563_v16 }
 0x154   :  { %v578_v17 = vsel %vm574_vm4, %v565_v12, %v567_v8  ;;  %v579_v10 = vsel %vm574_vm4, %v563_v16, %v565_v12  ;;  %v581_v13 = vadd.f32 %v580_v9, %v1735_v63 }
 0x155   :  { %v1752_v21 = vadd.f32 %v578_v17, %v475_v1  ;;  %v582_v14 = vadd.f32 %v579_v10, %v1737_v0 }
 0x156   :  { %v670_v26 = vadd.f32 %v1688_v47, %v581_v13 }
 0x157   :  { %v960_v25 = vpop.f32.mrf.mxu2  ;;  %v1014_v29 = vpop.f32.mrf.mxu0  ;;  %v671_v22 = vadd.f32 %v1690_v48, %v582_v14 }
 0x158   :  { %v973_v28 = vpop.f32.mrf.mxu3  ;;  %v1027_v30 = vpop.f32.mrf.mxu1  ;;  %1083 = vrot.lane.b32.xlu0 %v1014_v29, %s1401_s28 }
 0x159   :  { %1085 = vrot.lane.b32.xlu1 %v1027_v30, %s1401_s28 }
 0x15b   :  { %v1754_v31 = vpop.permute.xlu0 %568 }
 0x15c   :  { %v577_v32 = vsel %vm574_vm4, %v567_v8, %v1754_v31 }
 0x15d   :  { %v1759_v33 = vadd.f32 %v577_v32, %v476_v11 }
 0x15f   :  { %v1040_v34 = vpop.f32.mrf.mxu2  ;;  %v1016_v35 = vpop.f32.mrf.mxu0 }
 0x160   :  { %v1053_v36 = vpop.f32.mrf.mxu3  ;;  %1087 = vrot.lane.b32.xlu2 %v1040_v34, %s1401_s28  ;;  %v1029_v37 = vpop.f32.mrf.mxu1 }
 0x161   :  { %1089 = vrot.lane.b32.xlu0 %v1053_v36, %s1401_s28 }
 0x162   :  { %v571_v45 = vpop.permute.xlu1 %570 }
 0x163   :  { %v575_v3 = vsel %vm574_vm4, %v571_v45, %v573_v44  ;;  %v576_v35 = vsel %vm574_vm4, %v1754_v31, %v571_v45 }
 0x164   :  { %v586_v17 = vadd.f32 %v575_v3, %v1747_v24 }
 0x166   :  { %v675_v24 = vadd.f32 %v1700_v59, %v586_v17 }
 0x167   :  { %v1042_v38 = vpop.f32.mrf.mxu2  ;;  %v1066_v40 = vpop.f32.mrf.mxu0 }
 0x168   :  { %v1055_v39 = vpop.f32.mrf.mxu3  ;;  %1091 = vrot.lane.b32.xlu1 %v1066_v40, %s1401_s28  ;;  %v1079_v41 = vpop.f32.mrf.mxu1 }
 0x169   :  { %1093 = vrot.lane.b32.xlu2 %v1079_v41, %s1401_s28  ;;  %v585_v41 = vadd.f32 %v576_v35, %v1745_v23 }
 0x16f   :  { %v1068_v42 = vpop.f32.mrf.mxu0 }
 0x170   :  { %v1081_v43 = vpop.f32.mrf.mxu1 }
 0x172   :  { %v764_v46 = vpop.permute.xlu2 %763 }
 0x17b   :  { %v770_v53 = vpop.permute.xlu2 %769 }
 0x182   :  { %v760_v51 = vpop.permute.xlu0 %759 }
 0x183   :  { %v762_v52 = vpop.permute.xlu1 %761  ;;  %v777_v36 = vsel %vm771_vm5, %v770_v53, %v760_v51 }
 0x184   :  { %v775_v19 = vsel %vm771_vm5, %v762_v52, %v764_v46  ;;  %v776_v20 = vsel %vm771_vm5, %v760_v51, %v762_v52  ;;  %v783_v42 = vadd.f32 %v777_v36, %v675_v24 }
 0x185   :  { %v779_v7 = vadd.f32 %v775_v19, %v671_v22  ;;  %v778_v8 = vadd.f32 %v776_v20, %v670_v26 }
 0x18a   :  { %v1761_v57 = vpop.permute.xlu2 %871 }
 0x18b   :  { %v766_v54 = vpop.permute.xlu0 %765 }
 0x18c   :  { %v774_v51 = vsel %vm771_vm5, %v764_v46, %v766_v54  ;;  %v674_v46 = vadd.f32 %v1698_v58, %v585_v41 }
 0x192   :  { %v768_v56 = vpop.permute.xlu1 %767 }
 0x193   :  { %v1763_v62 = vpop.permute.xlu2 %877  ;;  %v772_v52 = vsel %vm771_vm5, %v768_v56, %v770_v53 }
 0x194   :  { %v782_v58 = vadd.f32 %v772_v52, %v674_v46 }
 0x19a   :  { %v868_v60 = vpop.permute.xlu0 %867 }
 0x19b   :  { %v870_v61 = vpop.permute.xlu1 %869  ;;  %v885_v39 = vsel %vm879_vm6, %v1763_v62, %v868_v60 }
 0x19c   :  { %v883_v63 = vsel %vm879_vm6, %v870_v61, %v1761_v57  ;;  %v884_v0 = vsel %vm879_vm6, %v868_v60, %v870_v61  ;;  %v891_v59 = vadd.f32 %v885_v39, %v783_v42  ;;  %v773_v60 = vsel %vm771_vm5, %v766_v54, %v768_v56 }
 0x19d   :  { %v886_v12 = vadd.f32 %v884_v0, %v778_v8  ;;  %v887_v16 = vadd.f32 %v883_v63, %v779_v7 }
 0x1a2   :  { %v1769_v4 = vpop.permute.xlu2 %979 }
 0x1a3   :  { %v1767_v2 = vpop.permute.xlu0 %873 }
 0x1a4   :  { %v882_v53 = vsel %vm879_vm6, %v1761_v57, %v1767_v2 }
 0x1aa   :  { %v1765_v1 = vpop.permute.xlu1 %875 }
 0x1ab   :  { %v1775_v11 = vpop.permute.xlu2 %985  ;;  %v880_v54 = vsel %vm879_vm6, %v1765_v1, %v1763_v62 }
 0x1ac   :  { %v890_v19 = vadd.f32 %v880_v54, %v782_v58 }
 0x1b2   :  { %v976_v5 = vpop.permute.xlu0 %975 }
 0x1b3   :  { %v978_v6 = vpop.permute.xlu1 %977  ;;  %v993_v31 = vsel %vm987_vm7, %v1775_v11, %v976_v5 }
 0x1b4   :  { %v991_v48 = vsel %vm987_vm7, %v978_v6, %v1769_v4  ;;  %v992_v47 = vsel %vm987_vm7, %v976_v5, %v978_v6  ;;  %v672_v5 = vadd.f32 %v1692_v49, %v1752_v21  ;;  %v673_v6 = vadd.f32 %v1694_v50, %v1759_v33 }
 0x1b5   :  { %v994_v28 = vadd.f32 %v992_v47, %v886_v12  ;;  %v995_v29 = vadd.f32 %v991_v48, %v887_v16  ;;  %v999_v9 = vadd.f32 %v993_v31, %v891_v59  ;;  %v881_v49 = vsel %vm879_vm6, %v1767_v2, %v1765_v1 }
 0x1b6   :  { %v780_v50 = vadd.f32 %v774_v51, %v672_v5  ;;  %v781_v21 = vadd.f32 %v773_v60, %v673_v6 }
 0x1b8   :  { %v888_v13 = vadd.f32 %v882_v53, %v780_v50  ;;  %v889_v14 = vadd.f32 %v881_v49, %v781_v21 }
 0x1ba   :  { %v1088_v27 = vpop.permute.xlu2 %1087 }
 0x1bb   :  { %v982_v15 = vpop.permute.xlu0 %981 }
 0x1bc   :  { %v990_v10 = vsel %vm987_vm7, %v1769_v4, %v982_v15 }
 0x1bd   :  { %v996_v2 = vadd.f32 %v990_v10, %v888_v13 }
 0x1c2   :  { %v984_v18 = vpop.permute.xlu1 %983 }
 0x1c3   :  { %v1094_v43 = vpop.permute.xlu2 %1093  ;;  %v988_v57 = vsel %vm987_vm7, %v984_v18, %v1775_v11  ;;  %v989_v62 = vsel %vm987_vm7, %v982_v15, %v984_v18 }
 0x1c4   :  { %v997_v20 = vadd.f32 %v989_v62, %v889_v14  ;;  %v998_v22 = vadd.f32 %v988_v57, %v890_v19 }
 0x1ca   :  { %v1084_v25 = vpop.permute.xlu0 %1083 }
 0x1cb   :  { %v1086_v30 = vpop.permute.xlu1 %1085  ;;  %v1101_v61 = vsel %vm1095_vm8, %v1094_v43, %v1084_v25 }
 0x1cc   :  { %v1099_v32 = vsel %vm1095_vm8, %v1086_v30, %v1088_v27  ;;  %v1100_v34 = vsel %vm1095_vm8, %v1084_v25, %v1086_v30  ;;  %v1107_v33 = vadd.f32 %v1101_v61, %v999_v9 }
 0x1cd   :  { %v1102_v37 = vadd.f32 %v1100_v34, %v994_v28  ;;  %v1103_v38 = vadd.f32 %v1099_v32, %v995_v29 }
 0x1ce   :  { %v1113_v26 = vmax.f32 %v1107_v33, 0.0 }
 0x1cf   :  { %v1109_v40 = vmax.f32 %v1103_v38, 0.0  ;;  %v1108_v44 = vmax.f32 %v1102_v37, 0.0 }
 0x1d0   :  { %v1122_v18 = vrot.slane %v1113_v26, 4 }
 0x1d1   :  { %v1120_v45 = vrot.slane %v1109_v40, 4 }
 0x1d3   :  { %v1124_v23 = vsel %vm1123_vm9, %v1108_v44, %v1120_v45  ;;  %v1090_v56 = vpop.permute.xlu0 %1089 }
 0x1d4   :  { %1130 = vst [vmem:[#allocation7] sm:$0xff] %v1124_v23  ;;  %v1098_v1 = vsel %vm1095_vm8, %v1088_v27, %v1090_v56 }
 0x1d5   :  { %v1104_v0 = vadd.f32 %v1098_v1, %v996_v2 }
 0x1d7   :  { %v1110_v27 = vmax.f32 %v1104_v0, 0.0 }
 0x1da   :  { %v1092_v63 = vpop.permute.xlu1 %1091 }
 0x1db   :  { %v1096_v4 = vsel %vm1095_vm8, %v1092_v63, %v1094_v43  ;;  %v1097_v11 = vsel %vm1095_vm8, %v1090_v56, %v1092_v63 }
 0x1dc   :  { %v1105_v3 = vadd.f32 %v1097_v11, %v997_v20  ;;  %v1106_v15 = vadd.f32 %v1096_v4, %v998_v22 }
 0x1de   :  { %v1111_v7 = vmax.f32 %v1105_v3, 0.0  ;;  %v1112_v8 = vmax.f32 %v1106_v15, 0.0 }
 0x1e0   :  { %v1121_v48 = vrot.slane %v1111_v7, 4  ;;  %v1126_v47 = vsel %vm1123_vm9, %v1112_v8, %v1122_v18 }
 0x1e1   :  { %1132 = vst [vmem:[#allocation7 + $0x10] sm:$0xff] %v1126_v47 }
 0x1e2   :  { %v1125_v55 = vsel %vm1123_vm9, %v1110_v27, %v1121_v48 }
 0x1e3   :  { %1131 = vst [vmem:[#allocation7 + $0x8] sm:$0xff] %v1125_v55 }
 0x1e4   :  { %1143 = dma.vmem_to_hbm [thread:$0]  %s1139_s30, 384, %s1141_s5, [#allocation4]  }
 0x1e5   :  { %1386 = dma.done.wait [#allocation4], 384  }
 0x1e6   :  { %1387 = vsyncadd [#allocation4], 4294966912 }
 0x1e7   :  { %1148 = vsyncpa [#allocation3], 1 }
 0x1e8   :  { %1149 = vsyncpa [#allocation6], 1 }
 0x1e9   :  { %1150 = vsyncpa [#allocation4], 1 }

</bundles_post_ra>
